<compile_context>
chip_gen: v7x
topology: tpu7x:2x2x1
jax: 0.10.0
libtpu: 0.0.40
codegen_flags: <defaults>
</compile_context>

<pallas_src>
import math

import jax
import jax.numpy as jnp
import numpy as np
from jax.experimental import pallas as pl
from jax.experimental.pallas import tpu as pltpu


def _get_sinusoid_encoding_table(n_position: int, dim_hid: int) -> jnp.ndarray:
    """Deterministic sinusoid table, shape (1, n_position + 1, dim_hid), float32.
    Mirrors PositionalEncoder._get_sinusoid_encoding_table exactly (host-side)."""
    pos = np.arange(n_position + 1, dtype=np.float64)[:, None]          # (P+1, 1)
    hid_j = np.arange(dim_hid)
    denom = np.power(10000.0, 2.0 * (hid_j // 2) / dim_hid)[None, :]    # (1, D)
    table = pos / denom                                                  # (P+1, D)
    table[:, 0::2] = np.sin(table[:, 0::2])
    table[:, 1::2] = np.cos(table[:, 1::2])
    return jnp.asarray(table[None, :, :], dtype=jnp.float32)            # (1, P+1, D)


def _add_pos_kernel(x_ref, pos_ref, o_ref):
    # x_ref: (tm, L) tile of the lane-dense slab; pos_ref: (1, L) resident row.
    o_ref[...] = x_ref[...] + pos_ref[...]


def _chip_config():
    """Returns (per_buffer_cap_bytes, vmem_limit_bytes, tensorcores_per_chip)."""
    kind = ""
    try:
        kind = jax.devices()[0].device_kind.lower()
    except Exception:
        pass
    if "v7" in kind:
        # v7x: 64 MiB physical VMEM per TC, 2 TCs/chip.
        # 2 in-bufs + 2 out-bufs at 8 MiB = 32 MiB + pos row, under a 44 MiB limit.
        return 8 * 1024 * 1024, 44 * 1024 * 1024, 2
    if ("v6" in kind) or ("v5e" in kind) or ("v5 lite" in kind) or ("v5litepod" in kind):
        # v5e / v6e: 128 MiB physical VMEM (v5e scoped default is only 16 MiB, so the
        # explicit limit below is required for the bigger tiles to be legal).
        return 12 * 1024 * 1024, 64 * 1024 * 1024, 1
    # Unknown / older generation: conservative budget that is safe everywhere.
    return 4 * 1024 * 1024, 32 * 1024 * 1024, 1


def _even_steps_tm(n_rows: int, tm: int) -> int:
    """Best-effort: shrink tm (multiple of 8) so cdiv(n_rows, tm) is even and >= 4.
    Used on 2-TensorCore chips so the 'parallel' grid axis splits evenly across TCs
    with at least 2 pipelined steps per core."""
    steps = pl.cdiv(n_rows, tm)
    if steps <= 1:
        return tm
    start = max(4, steps + (steps % 2))
    for s in range(start, start + 17, 2):                 # try a few even step counts
        cand = max(8, ((pl.cdiv(n_rows, s) + 7) // 8) * 8)
        if cand <= n_rows and pl.cdiv(n_rows, cand) == s:
            return cand
    return tm


def positional_encoder_forward(x: jnp.ndarray, pos_table: jnp.ndarray) -> jnp.ndarray:
    """x: (B, S, D) float32; pos_table: (1, num_pos+1, D) float32.
    Returns x + pos_table[:, S] broadcast (exact PyTorch forward semantics)."""
    B, S, D = x.shape
    assert S < pos_table.shape[1], "sequence length exceeds positional table size"
    # Static row selection (glue): pos_table[:, x.size(1)] -> shape (1, D)
    pos_row = pos_table[:, S, :]                                         # (1, D)

    total = B * S * D
    buf_cap, vmem_limit, n_cores = _chip_config()

    # ---- Build a lane-dense 2D slab (last dim a multiple of 128) ----
    pad = 0
    if D % 128 == 0:
        # Already lane-dense; keep D as the last dim, all tiling on the row axis.
        L = D
        x2d = x.reshape(total // L, L)
        pos2d = pos_row                                                  # (1, D)
    else:
        L = (D * 128) // math.gcd(D, 128)                                # lcm(D, 128)
        if total % L == 0:
            # Grow the lane width up to 4096 (multi-vreg-wide output slab).
            while L * 2 <= 4096 and total % (L * 2) == 0:
                L *= 2
            x2d = x.reshape(total // L, L)
        else:
            # Pad the flat vector by < L elements so every store stays unmasked,
            # then slice the flat output back to `total` afterwards.
            pad = (-total) % L
            x_flat = jnp.pad(x.reshape(total), (0, pad))
            x2d = x_flat.reshape((total + pad) // L, L)
        # Each packed row holds L//D consecutive original rows -> tile the pos row.
        pos2d = jnp.tile(pos_row, (1, L // D))                           # (1, L)

    n_rows = x2d.shape[0]

    # ---- Row-tile selection: biggest multiple of 8 under the per-buffer byte cap ----
    bytes_per_row = L * 4
    tm_cap = max(8, (buf_cap // bytes_per_row) // 8 * 8)
    tm = min(n_rows, tm_cap)
    if tm < n_rows:
        tm = max(8, (tm // 8) * 8)        # multiple of 8 unless it is the full dim
        if n_cores == 2:
            tm = _even_steps_tm(n_rows, tm)   # v7x: even, >=4 steps across 2 TCs

    grid = (pl.cdiv(n_rows, tm),)

    out2d = pl.pallas_call(
        _add_pos_kernel,
        out_shape=jax.ShapeDtypeStruct((n_rows, L), x.dtype),
        grid_spec=pltpu.PrefetchScalarGridSpec(
            num_scalar_prefetch=0,
            grid=grid,
            in_specs=[
                pl.BlockSpec((tm, L), lambda i: (i, 0)),
                # Constant index_map keeps the pos row resident across grid steps.
                pl.BlockSpec((1, L), lambda i: (0, 0)),
            ],
            out_specs=pl.BlockSpec((tm, L), lambda i: (i, 0)),
        ),
        compiler_params=pltpu.CompilerParams(
            dimension_semantics=("parallel",),
            vmem_limit_bytes=vmem_limit,
        ),
        # Pure streaming add: let XLA reuse the input HBM buffer for the output
        # (XLA inserts a copy automatically if the caller's buffer is not donatable).
        input_output_aliases={0: 0},
        # Advisory: 1 flop/element, pure HBM-bound (read + write the slab, tiny pos row).
        cost_estimate=pl.CostEstimate(
            flops=total,
            transcendentals=0,
            bytes_accessed=2 * n_rows * L * 4 + L * 4,
        ),
    )(x2d, pos2d)

    out_flat = out2d.reshape(n_rows * L)
    if pad:
        out_flat = out_flat[:total]
    return out_flat.reshape(B, S, D)


if __name__ == "__main__":
    # Small shapes consistent with the module: batch=2, seq=8, hidden=32
    B, S, D = 2, 8, 32
    num_pos = 128

    key = jax.random.PRNGKey(0)
    x = jax.random.normal(key, (B, S, D), dtype=jnp.float32)

    pos_table = _get_sinusoid_encoding_table(num_pos, D)

    fwd = jax.jit(positional_encoder_forward)
    out = jax.block_until_ready(fwd(x, pos_table))

    # Reference check in plain JAX (same semantics as the PyTorch forward)
    ref = x + pos_table[:, S, :]
    np.testing.assert_allclose(np.asarray(out), np.asarray(ref), rtol=1e-6, atol=1e-6)

    print("KERNEL_OK")
</pallas_src>

<mosaic_0001>
module attributes {stable_mosaic.version = 11 : i64} {
  func.func @_add_pos_kernel(%arg0: i32, %arg1: memref<1x512xf32, #tpu.memory_space<vmem>>, %arg2: memref<1x512xf32, #tpu.memory_space<vmem>>, %arg3: memref<1x512xf32, #tpu.memory_space<vmem>>) attributes {dimension_semantics = [#tpu.dimension_semantics<parallel>], iteration_bounds = array<i64: 1>, scalar_prefetch = 0 : i64, scratch_operands = 0 : i64, tpu.core_type = #tpu.core_type<tc>, window_params = [{transform_indices = @transform_0, window_bounds = array<i64: 1, 512>}, {pipeline_mode = #tpu.pipeline_mode<synchronous>, transform_indices = @transform_1, window_bounds = array<i64: 1, 512>}, {transform_indices = @transform_2, window_bounds = array<i64: 1, 512>}]} {
    %c0 = arith.constant 0 : index
    %c0_0 = arith.constant 0 : index
    %0 = vector.load %arg1[%c0, %c0_0] : memref<1x512xf32, #tpu.memory_space<vmem>>, vector<1x512xf32>
    %c0_1 = arith.constant 0 : index
    %c0_2 = arith.constant 0 : index
    %1 = vector.load %arg2[%c0_1, %c0_2] : memref<1x512xf32, #tpu.memory_space<vmem>>, vector<1x512xf32>
    %2 = arith.addf %0, %1 : vector<1x512xf32>
    %c0_3 = arith.constant 0 : index
    %c0_4 = arith.constant 0 : index
    %3 = vector.load %arg3[%c0_3, %c0_4] : memref<1x512xf32, #tpu.memory_space<vmem>>, vector<1x512xf32>
    tpu.vector_store %arg3[%c0_3, %c0_4], %2 {strides = array<i32>} : memref<1x512xf32, #tpu.memory_space<vmem>>, vector<1x512xf32>,
    return
  }
  func.func @transform_0(%arg0: i32) -> (i32, i32) {
    %c0_i32 = arith.constant 0 : i32
    %c0_i32_0 = arith.constant 0 : i32
    return %arg0, %c0_i32 : i32, i32
  }
  func.func @transform_1(%arg0: i32) -> (i32, i32) {
    %c0_i32 = arith.constant 0 : i32
    %c0_i32_0 = arith.constant 0 : i32
    %c0_i32_1 = arith.constant 0 : i32
    return %c0_i32, %c0_i32_0 : i32, i32
  }
  func.func @transform_2(%arg0: i32) -> (i32, i32) {
    %c0_i32 = arith.constant 0 : i32
    %c0_i32_0 = arith.constant 0 : i32
    return %arg0, %c0_i32 : i32, i32
  }
}

</mosaic_0001>

<bundles_post_ra>
// kernel: positional_encoder_forward.1
= control target key start
LH: loop header
LB: loop body
LE: loop exit
PB: predicated region body
PF: predicated region fallthrough
CT: control target
= control target key end

     0   :  { %v14_v0 = vlaneseq  ;;  %s47_s0 = inlined_call_operand.vmem [shape: f32[1,512], index: 0, kind: input, shape index: {}, may-alias: {0,2}]   ;;  %s48_s1 = inlined_call_operand.vmem [shape: f32[1,512], index: 1, kind: input, shape index: {}]   ;;  %s49_s2 = inlined_call_operand.vmem [shape: f32[1,512], index: 2, kind: output, shape index: {}, may-alias: {0,2}]  }
   0x1   :  { %v11_v1 = vld [vmem:[%s47_s0] sm:$0xf] }
   0x2   :  { %v12_v2 = vld [vmem:[%s48_s1] sm:$0xf]  ;;  %vm16_vm0 = vcmp.lt.s32.totalorder %v14_v0, 512 }
   0x3   :  { %v13_v3 = vadd.f32 %v12_v2, %v11_v1 }
   0x5   :  { %18 = vst.msk [vmem:[%s49_s2] sm:$0xf] %vm16_vm0, %v13_v3 }

</bundles_post_ra>
